<compile_context>
chip_gen: v7x
topology: tpu7x:2x2x1
jax: 0.10.0
libtpu: 0.0.40
codegen_flags: <defaults>
</compile_context>

<pallas_src>
import jax
import jax.numpy as jnp
from jax.experimental import pallas as pl
from jax.experimental.pallas import tpu as pltpu  # noqa: F401 (kept for convenience)

# ---------------- model dims ----------------
B = 2        # batch
S = 8        # sequence length
D = 32       # d_model
H = 4        # num_heads
DH = D // H  # head dim
DFF = 64     # d_ff
EPS = 1e-5

# packed (D, _WIN_COLS) bf16 weight slab; chunks start at multiples of 128 lanes
_QKV_OFF = 0      # (D, 3*D) = (32, 96)   [Wq*scale | Wk | Wv]
_WOOG_OFF = 128   # (D, 2*D) = (32, 64)   [Wo | Wo@Wg]
_W1_OFF = 256     # (D, DFF) = (32, 64)   W1
_WIN_COLS = 384

# rows of the packed (8, 128) f32 parameter-vector slab
_R_BQKV, _R_BOG, _R_B1, _R_B2G, _R_G1, _R_BE1, _R_G2, _R_BE2 = range(8)


def _layer_norm(h, g, b):
    mu = jnp.mean(h, axis=-1, keepdims=True)
    var = jnp.mean(jnp.square(h - mu), axis=-1, keepdims=True)
    return (h - mu) * jax.lax.rsqrt(var + EPS) * g + b


def encoder_layer_kernel(x_ref, w_in_ref, w2g_ref, pvec_ref, o_ref):
    f32 = jnp.float32
    bf16 = jnp.bfloat16

    xf = x_ref[...].astype(f32)                       # (B*S, D) row slab

    # ---- unpack packed parameters once (hoisted) ----
    pv = pvec_ref[...]                                # (8, 128) f32
    b_qkv = pv[_R_BQKV:_R_BQKV + 1, 0:3 * D]          # (1, 96)  bq pre-scaled
    b_og = pv[_R_BOG:_R_BOG + 1, 0:2 * D]             # (1, 64)  [bo | bo@Wg + bg]
    b_1 = pv[_R_B1:_R_B1 + 1, 0:DFF]
    b_2g = pv[_R_B2G:_R_B2G + 1, 0:2 * D]             # (1, 64)  [b2 | b2@Wg + bg]
    g1 = pv[_R_G1:_R_G1 + 1, 0:D]
    be1 = pv[_R_BE1:_R_BE1 + 1, 0:D]
    g2 = pv[_R_G2:_R_G2 + 1, 0:D]
    be2 = pv[_R_BE2:_R_BE2 + 1, 0:D]

    w_in = w_in_ref[...]                              # (D, 384) bf16
    w_qkv = w_in[:, _QKV_OFF:_QKV_OFF + 3 * D]        # scale already folded into Wq
    w_oog = w_in[:, _WOOG_OFF:_WOOG_OFF + 2 * D]      # [Wo | Wo@Wg]
    w_1 = w_in[:, _W1_OFF:_W1_OFF + DFF]
    w_2g = w2g_ref[...]                               # (DFF, 2*D) bf16 [W2 | W2@Wg]

    def mm(h, w):
        # bf16 MXU operands, f32 accumulation (elementwise math stays in f32)
        return jnp.dot(h.astype(bf16), w, preferred_element_type=f32)

    # ---- fused QKV projection: one MXU matmul for the whole batch ----
    qkv = mm(xf, w_qkv) + b_qkv                       # (B*S, 3*D) f32, q pre-scaled

    # ---- multi-head self-attention, each head batched over the batch axis ----
    ctx_heads = []
    for h in range(H):                                # unrolled (H=4)
        q_h = qkv[:, h * DH:(h + 1) * DH].reshape(B, S, DH)
        k_h = qkv[:, D + h * DH:D + (h + 1) * DH].reshape(B, S, DH)
        v_h = qkv[:, 2 * D + h * DH:2 * D + (h + 1) * DH].reshape(B, S, DH)
        s = jnp.einsum("bqd,bkd->bqk", q_h.astype(bf16), k_h.astype(bf16),
                       preferred_element_type=f32)    # (B, S, S), scale pre-folded
        s = s - jnp.max(s, axis=-1, keepdims=True)
        p = jnp.exp(s)
        p = p * pl.reciprocal(jnp.sum(p, axis=-1, keepdims=True), approx=True)
        ctx_heads.append(jnp.einsum("bqk,bkd->bqd",
                                    p.astype(bf16), v_h.astype(bf16),
                                    preferred_element_type=f32))  # (B, S, DH)
    ctx = jnp.concatenate(ctx_heads, axis=-1).reshape(B * S, D)   # (B*S, D)

    # ---- out-projection AND its gate pre-activation in a single matmul ----
    att_g = mm(ctx, w_oog) + b_og                     # (B*S, 2*D)
    att = att_g[:, 0:D]
    gate1 = jax.nn.sigmoid(att_g[:, D:2 * D])
    # dropout -> identity (eval mode)
    x1 = _layer_norm(xf + gate1 * att, g1, be1)

    # ---- feed forward; second gate pre-activation fused into the W2 matmul ----
    h1 = jnp.maximum(mm(x1, w_1) + b_1, 0.0)          # (B*S, DFF)
    ff_g = mm(h1, w_2g) + b_2g                        # (B*S, 2*D)
    ff = ff_g[:, 0:D]
    gate2 = jax.nn.sigmoid(ff_g[:, D:2 * D])
    # dropout -> identity (eval mode)
    x2 = _layer_norm(x1 + gate2 * ff, g2, be2)

    o_ref[...] = x2.astype(o_ref.dtype)               # (B*S, D)


def pack_params(p):
    """Pack the 18 parameter tensors into 3 arrays. Call ONCE at init."""
    f32 = jnp.float32
    scale = 1.0 / (DH ** 0.5)

    # critical-path fusions, done in f32 BEFORE the bf16 cast
    wq_s = p["wq"] * scale
    bq_s = p["bq"] * scale
    w_og = p["wo"] @ p["wg"]                    # gate1 preact weight
    w_2g = p["w2"] @ p["wg"]                    # gate2 preact weight
    b_og_gate = p["bo"] @ p["wg"] + p["bg"]     # gate1 preact bias
    b_2g_gate = p["b2"] @ p["wg"] + p["bg"]     # gate2 preact bias

    w_in = jnp.zeros((D, _WIN_COLS), f32)
    w_in = w_in.at[:, _QKV_OFF:_QKV_OFF + 3 * D].set(
        jnp.concatenate([wq_s, p["wk"], p["wv"]], axis=1))
    w_in = w_in.at[:, _WOOG_OFF:_WOOG_OFF + 2 * D].set(
        jnp.concatenate([p["wo"], w_og], axis=1))
    w_in = w_in.at[:, _W1_OFF:_W1_OFF + DFF].set(p["w1"])
    w_in = w_in.astype(jnp.bfloat16)

    w2g = jnp.concatenate([p["w2"], w_2g], axis=1).astype(jnp.bfloat16)  # (DFF, 2D)

    pvec = jnp.zeros((8, 128), f32)
    rows = [
        (_R_BQKV, jnp.concatenate([bq_s, p["bk"], p["bv"]], axis=1)),
        (_R_BOG, jnp.concatenate([p["bo"], b_og_gate], axis=1)),
        (_R_B1, p["b1"]),
        (_R_B2G, jnp.concatenate([p["b2"], b_2g_gate], axis=1)),
        (_R_G1, p["g1"]), (_R_BE1, p["be1"]), (_R_G2, p["g2"]), (_R_BE2, p["be2"]),
    ]
    for r, vec in rows:
        pvec = pvec.at[r, 0:vec.shape[1]].set(vec[0])
    return w_in, w2g, pvec


@jax.jit
def encoder_layer(x, w_in, w2g, pvec):
    """x: (B, S, D) float32. w_in/w2g/pvec: pre-packed params from pack_params()."""
    xf = x.reshape(B * S, D)
    cost = pl.CostEstimate(
        flops=2 * B * S * (D * 3 * D + D * 2 * D + D * DFF + DFF * 2 * D)
              + 4 * B * H * S * S * DH,
        transcendentals=B * H * S * S + 2 * B * S * D + 2 * B * S,
        bytes_accessed=2 * B * S * D * 4 + D * _WIN_COLS * 2 + DFF * 2 * D * 2 + 8 * 128 * 4,
    )
    out = pl.pallas_call(
        encoder_layer_kernel,
        out_shape=jax.ShapeDtypeStruct((B * S, D), x.dtype),
        cost_estimate=cost,
    )(xf, w_in, w2g, pvec)
    return out.reshape(B, S, D)


def init_params(key):
    ks = jax.random.split(key, 18)

    def w(k, shape, fan_in):
        return jax.random.normal(k, shape, jnp.float32) / jnp.sqrt(jnp.float32(fan_in))

    def b(k, n, s=0.1):
        return s * jax.random.normal(k, (1, n), jnp.float32)

    return {
        "wq": w(ks[0], (D, D), D),  "bq": b(ks[7], D),
        "wk": w(ks[1], (D, D), D),  "bk": b(ks[8], D),
        "wv": w(ks[2], (D, D), D),  "bv": b(ks[9], D),
        "wo": w(ks[3], (D, D), D),  "bo": b(ks[10], D),
        "wg": w(ks[4], (D, D), D),  "bg": b(ks[11], D, 0.3),
        "w1": w(ks[5], (D, DFF), D),   "b1": b(ks[12], DFF),
        "w2": w(ks[6], (DFF, D), DFF), "b2": b(ks[13], D),
        "g1": 1.0 + b(ks[14], D), "be1": b(ks[15], D),
        "g2": 1.0 + b(ks[16], D), "be2": b(ks[17], D),
    }


def _reference(x, p, use_bf16_matmuls):
    """Pure-JAX reference mirroring the PyTorch forward (eval mode, NO weight fusion).

    With use_bf16_matmuls=True, matmul operands are rounded to bf16 with f32
    accumulation (close to the kernel's MXU numerics); otherwise pure f32.
    """
    f32, bf16 = jnp.float32, jnp.bfloat16

    def mm(a, w):
        if use_bf16_matmuls:
            return jnp.dot(a.astype(bf16), w.astype(bf16), preferred_element_type=f32)
        return jnp.dot(a, w, preferred_element_type=f32)

    def lin(h, w, b):
        return mm(h, w) + b

    def ln(h, g, b):
        mu = h.mean(-1, keepdims=True)
        var = ((h - mu) ** 2).mean(-1, keepdims=True)
        return (h - mu) * jax.lax.rsqrt(var + EPS) * g + b

    def gate(h):
        return jax.nn.sigmoid(lin(h, p["wg"], p["bg"])) * h

    def cast(a):
        return a.astype(bf16) if use_bf16_matmuls else a

    q = lin(x, p["wq"], p["bq"]).reshape(B, S, H, DH).transpose(0, 2, 1, 3)
    k = lin(x, p["wk"], p["bk"]).reshape(B, S, H, DH).transpose(0, 2, 1, 3)
    v = lin(x, p["wv"], p["bv"]).reshape(B, S, H, DH).transpose(0, 2, 1, 3)
    scores = jnp.einsum("bhqd,bhkd->bhqk", cast(q), cast(k),
                        preferred_element_type=f32) / jnp.sqrt(jnp.float32(DH))
    attn = jax.nn.softmax(scores, axis=-1)
    ctx = jnp.einsum("bhqk,bhkd->bhqd", cast(attn), cast(v),
                     preferred_element_type=f32).transpose(0, 2, 1, 3).reshape(B, S, D)
    att = lin(ctx, p["wo"], p["bo"])
    x1 = ln(x + gate(att), p["g1"], p["be1"])
    ff = lin(jax.nn.relu(lin(x1, p["w1"], p["b1"])), p["w2"], p["b2"])
    x2 = ln(x1 + gate(ff), p["g2"], p["be2"])
    return x2


if __name__ == "__main__":
    key = jax.random.PRNGKey(0)
    kx, kp = jax.random.split(key)
    x = jax.random.normal(kx, (B, S, D), jnp.float32)
    params = init_params(kp)

    # Pack parameters ONCE at init (outside the per-call path).
    w_in, w2g, pvec = pack_params(params)

    out = jax.block_until_ready(encoder_layer(x, w_in, w2g, pvec))
    assert out.shape == (B, S, D)

    ref_bf16 = _reference(x, params, use_bf16_matmuls=True)   # ~kernel numerics
    ref_f32 = _reference(x, params, use_bf16_matmuls=False)   # module's f32 semantics

    err_bf16 = float(jnp.max(jnp.abs(out - ref_bf16)))
    err_f32 = float(jnp.max(jnp.abs(out - ref_f32)))
    # bf16 ref tolerance is slightly looser than before because the kernel now uses
    # pre-fused (Wo@Wg, W2@Wg) gate weights (different bf16 rounding/association).
    assert jnp.allclose(out, ref_bf16, atol=1e-1, rtol=1e-1), err_bf16
    assert jnp.allclose(out, ref_f32, atol=1.5e-1, rtol=1.5e-1), err_f32
    print("KERNEL_OK")
</pallas_src>

<mosaic_0001>
module attributes {stable_mosaic.version = 11 : i64} {
  func.func @encoder_layer_kernel(%arg0: memref<16x32xf32, #tpu.memory_space<vmem>>, %arg1: memref<32x384xbf16, #tpu.memory_space<vmem>>, %arg2: memref<64x64xbf16, #tpu.memory_space<vmem>>, %arg3: memref<8x128xf32, #tpu.memory_space<vmem>>, %arg4: memref<16x32xf32, #tpu.memory_space<vmem>>) attributes {dimension_semantics = [], scalar_prefetch = 0 : i64, scratch_operands = 0 : i64, tpu.core_type = #tpu.core_type<tc>} {
    %c0 = arith.constant 0 : index
    %c0_0 = arith.constant 0 : index
    %0 = vector.load %arg0[%c0, %c0_0] : memref<16x32xf32, #tpu.memory_space<vmem>>, vector<16x32xf32>
    %c0_1 = arith.constant 0 : index
    %c0_2 = arith.constant 0 : index
    %1 = vector.load %arg3[%c0_1, %c0_2] : memref<8x128xf32, #tpu.memory_space<vmem>>, vector<8x128xf32>
    %2 = vector.extract_strided_slice %1 {offsets = [0, 0], sizes = [1, 96], strides = [1, 1]} : vector<8x128xf32> to vector<1x96xf32>
    %3 = vector.extract_strided_slice %1 {offsets = [1, 0], sizes = [1, 64], strides = [1, 1]} : vector<8x128xf32> to vector<1x64xf32>
    %4 = vector.extract_strided_slice %1 {offsets = [2, 0], sizes = [1, 64], strides = [1, 1]} : vector<8x128xf32> to vector<1x64xf32>
    %5 = vector.extract_strided_slice %1 {offsets = [3, 0], sizes = [1, 64], strides = [1, 1]} : vector<8x128xf32> to vector<1x64xf32>
    %6 = vector.extract_strided_slice %1 {offsets = [4, 0], sizes = [1, 32], strides = [1, 1]} : vector<8x128xf32> to vector<1x32xf32>
    %7 = vector.extract_strided_slice %1 {offsets = [5, 0], sizes = [1, 32], strides = [1, 1]} : vector<8x128xf32> to vector<1x32xf32>
    %8 = vector.extract_strided_slice %1 {offsets = [6, 0], sizes = [1, 32], strides = [1, 1]} : vector<8x128xf32> to vector<1x32xf32>
    %9 = vector.extract_strided_slice %1 {offsets = [7, 0], sizes = [1, 32], strides = [1, 1]} : vector<8x128xf32> to vector<1x32xf32>
    %c0_3 = arith.constant 0 : index
    %c0_4 = arith.constant 0 : index
    %10 = vector.load %arg1[%c0_3, %c0_4] : memref<32x384xbf16, #tpu.memory_space<vmem>>, vector<32x384xbf16>
    %11 = vector.extract_strided_slice %10 {offsets = [0, 0], sizes = [32, 96], strides = [1, 1]} : vector<32x384xbf16> to vector<32x96xbf16>
    %12 = vector.extract_strided_slice %10 {offsets = [0, 128], sizes = [32, 64], strides = [1, 1]} : vector<32x384xbf16> to vector<32x64xbf16>
    %13 = vector.extract_strided_slice %10 {offsets = [0, 256], sizes = [32, 64], strides = [1, 1]} : vector<32x384xbf16> to vector<32x64xbf16>
    %c0_5 = arith.constant 0 : index
    %c0_6 = arith.constant 0 : index
    %14 = vector.load %arg2[%c0_5, %c0_6] : memref<64x64xbf16, #tpu.memory_space<vmem>>, vector<64x64xbf16>
    %15 = arith.truncf %0 : vector<16x32xf32> to vector<16x32xbf16>
    %cst = arith.constant dense<0.000000e+00> : vector<16x96xf32>
    %16 = tpu.matmul %15, %11, %cst {dimension_numbers = #tpu.dot_dimension_numbers<[1], [0], [0], [1], [0, 0, 1, 1], [], []>} : vector<16x32xbf16>, vector<32x96xbf16>, vector<16x96xf32> -> vector<16x96xf32>
    %17 = vector.broadcast %2 : vector<1x96xf32> to vector<16x96xf32>
    %18 = arith.addf %16, %17 : vector<16x96xf32>
    %19 = vector.extract_strided_slice %18 {offsets = [0, 0], sizes = [16, 8], strides = [1, 1]} : vector<16x96xf32> to vector<16x8xf32>
    %20 = vector.shape_cast %19 : vector<16x8xf32> to vector<2x8x8xf32>
    %21 = vector.extract_strided_slice %18 {offsets = [0, 32], sizes = [16, 8], strides = [1, 1]} : vector<16x96xf32> to vector<16x8xf32>
    %22 = vector.shape_cast %21 : vector<16x8xf32> to vector<2x8x8xf32>
    %23 = vector.extract_strided_slice %18 {offsets = [0, 64], sizes = [16, 8], strides = [1, 1]} : vector<16x96xf32> to vector<16x8xf32>
    %24 = vector.shape_cast %23 : vector<16x8xf32> to vector<2x8x8xf32>
    %25 = arith.truncf %20 : vector<2x8x8xf32> to vector<2x8x8xbf16>
    %26 = arith.truncf %22 : vector<2x8x8xf32> to vector<2x8x8xbf16>
    "tpu.trace_start"() <{level = 10 : i32, message = "bqd,bkd->bqk"}> : () -> ()
    %cst_7 = arith.constant dense<0.000000e+00> : vector<2x8x8xf32>
    %27 = tpu.matmul %25, %26, %cst_7 {dimension_numbers = #tpu.dot_dimension_numbers<[2], [2], [1], [1], [0, 0, 0, 1, 1, 1], [0], [0]>} : vector<2x8x8xbf16>, vector<2x8x8xbf16>, vector<2x8x8xf32> -> vector<2x8x8xf32>
    "tpu.trace_stop"() : () -> ()
    %cst_8 = arith.constant dense<0xFF800000> : vector<2x8xf32>
    %28 = vector.multi_reduction <maximumf>, %27, %cst_8 [2] : vector<2x8x8xf32> to vector<2x8xf32>
    %29 = vector.shape_cast %28 : vector<2x8xf32> to vector<2x8x1xf32>
    %30 = vector.broadcast %29 : vector<2x8x1xf32> to vector<2x8x8xf32>
    %31 = arith.subf %27, %30 : vector<2x8x8xf32>
    %32 = math.exp %31 : vector<2x8x8xf32>
    %cst_9 = arith.constant dense<0.000000e+00> : vector<2x8xf32>
    %33 = vector.multi_reduction <add>, %32, %cst_9 [2] : vector<2x8x8xf32> to vector<2x8xf32>
    %34 = vector.shape_cast %33 : vector<2x8xf32> to vector<2x8x1xf32>
    %35 = tpu.reciprocal %34 {approx = true} : vector<2x8x1xf32> -> vector<2x8x1xf32>
    %36 = vector.broadcast %35 : vector<2x8x1xf32> to vector<2x8x8xf32>
    %37 = arith.mulf %32, %36 : vector<2x8x8xf32>
    %38 = arith.truncf %37 : vector<2x8x8xf32> to vector<2x8x8xbf16>
    %39 = arith.truncf %24 : vector<2x8x8xf32> to vector<2x8x8xbf16>
    "tpu.trace_start"() <{level = 10 : i32, message = "bqk,bkd->bqd"}> : () -> ()
    %cst_10 = arith.constant dense<0.000000e+00> : vector<2x8x8xf32>
    %40 = tpu.matmul %38, %39, %cst_10 {dimension_numbers = #tpu.dot_dimension_numbers<[2], [1], [1], [2], [0, 0, 0, 1, 1, 2], [0], [0]>} : vector<2x8x8xbf16>, vector<2x8x8xbf16>, vector<2x8x8xf32> -> vector<2x8x8xf32>
    "tpu.trace_stop"() : () -> ()
    %41 = vector.extract_strided_slice %18 {offsets = [0, 8], sizes = [16, 8], strides = [1, 1]} : vector<16x96xf32> to vector<16x8xf32>
    %42 = vector.shape_cast %41 : vector<16x8xf32> to vector<2x8x8xf32>
    %43 = vector.extract_strided_slice %18 {offsets = [0, 40], sizes = [16, 8], strides = [1, 1]} : vector<16x96xf32> to vector<16x8xf32>
    %44 = vector.shape_cast %43 : vector<16x8xf32> to vector<2x8x8xf32>
    %45 = vector.extract_strided_slice %18 {offsets = [0, 72], sizes = [16, 8], strides = [1, 1]} : vector<16x96xf32> to vector<16x8xf32>
    %46 = vector.shape_cast %45 : vector<16x8xf32> to vector<2x8x8xf32>
    %47 = arith.truncf %42 : vector<2x8x8xf32> to vector<2x8x8xbf16>
    %48 = arith.truncf %44 : vector<2x8x8xf32> to vector<2x8x8xbf16>
    "tpu.trace_start"() <{level = 10 : i32, message = "bqd,bkd->bqk"}> : () -> ()
    %cst_11 = arith.constant dense<0.000000e+00> : vector<2x8x8xf32>
    %49 = tpu.matmul %47, %48, %cst_11 {dimension_numbers = #tpu.dot_dimension_numbers<[2], [2], [1], [1], [0, 0, 0, 1, 1, 1], [0], [0]>} : vector<2x8x8xbf16>, vector<2x8x8xbf16>, vector<2x8x8xf32> -> vector<2x8x8xf32>
    "tpu.trace_stop"() : () -> ()
    %cst_12 = arith.constant dense<0xFF800000> : vector<2x8xf32>
    %50 = vector.multi_reduction <maximumf>, %49, %cst_12 [2] : vector<2x8x8xf32> to vector<2x8xf32>
    %51 = vector.shape_cast %50 : vector<2x8xf32> to vector<2x8x1xf32>
    %52 = vector.broadcast %51 : vector<2x8x1xf32> to vector<2x8x8xf32>
    %53 = arith.subf %49, %52 : vector<2x8x8xf32>
    %54 = math.exp %53 : vector<2x8x8xf32>
    %cst_13 = arith.constant dense<0.000000e+00> : vector<2x8xf32>
    %55 = vector.multi_reduction <add>, %54, %cst_13 [2] : vector<2x8x8xf32> to vector<2x8xf32>
    %56 = vector.shape_cast %55 : vector<2x8xf32> to vector<2x8x1xf32>
    %57 = tpu.reciprocal %56 {approx = true} : vector<2x8x1xf32> -> vector<2x8x1xf32>
    %58 = vector.broadcast %57 : vector<2x8x1xf32> to vector<2x8x8xf32>
    %59 = arith.mulf %54, %58 : vector<2x8x8xf32>
    %60 = arith.truncf %59 : vector<2x8x8xf32> to vector<2x8x8xbf16>
    %61 = arith.truncf %46 : vector<2x8x8xf32> to vector<2x8x8xbf16>
    "tpu.trace_start"() <{level = 10 : i32, message = "bqk,bkd->bqd"}> : () -> ()
    %cst_14 = arith.constant dense<0.000000e+00> : vector<2x8x8xf32>
    %62 = tpu.matmul %60, %61, %cst_14 {dimension_numbers = #tpu.dot_dimension_numbers<[2], [1], [1], [2], [0, 0, 0, 1, 1, 2], [0], [0]>} : vector<2x8x8xbf16>, vector<2x8x8xbf16>, vector<2x8x8xf32> -> vector<2x8x8xf32>
    "tpu.trace_stop"() : () -> ()
    %63 = vector.extract_strided_slice %18 {offsets = [0, 16], sizes = [16, 8], strides = [1, 1]} : vector<16x96xf32> to vector<16x8xf32>
    %64 = vector.shape_cast %63 : vector<16x8xf32> to vector<2x8x8xf32>
    %65 = vector.extract_strided_slice %18 {offsets = [0, 48], sizes = [16, 8], strides = [1, 1]} : vector<16x96xf32> to vector<16x8xf32>
    %66 = vector.shape_cast %65 : vector<16x8xf32> to vector<2x8x8xf32>
    %67 = vector.extract_strided_slice %18 {offsets = [0, 80], sizes = [16, 8], strides = [1, 1]} : vector<16x96xf32> to vector<16x8xf32>
    %68 = vector.shape_cast %67 : vector<16x8xf32> to vector<2x8x8xf32>
    %69 = arith.truncf %64 : vector<2x8x8xf32> to vector<2x8x8xbf16>
    %70 = arith.truncf %66 : vector<2x8x8xf32> to vector<2x8x8xbf16>
    "tpu.trace_start"() <{level = 10 : i32, message = "bqd,bkd->bqk"}> : () -> ()
    %cst_15 = arith.constant dense<0.000000e+00> : vector<2x8x8xf32>
    %71 = tpu.matmul %69, %70, %cst_15 {dimension_numbers = #tpu.dot_dimension_numbers<[2], [2], [1], [1], [0, 0, 0, 1, 1, 1], [0], [0]>} : vector<2x8x8xbf16>, vector<2x8x8xbf16>, vector<2x8x8xf32> -> vector<2x8x8xf32>
    "tpu.trace_stop"() : () -> ()
    %cst_16 = arith.constant dense<0xFF800000> : vector<2x8xf32>
    %72 = vector.multi_reduction <maximumf>, %71, %cst_16 [2] : vector<2x8x8xf32> to vector<2x8xf32>
    %73 = vector.shape_cast %72 : vector<2x8xf32> to vector<2x8x1xf32>
    %74 = vector.broadcast %73 : vector<2x8x1xf32> to vector<2x8x8xf32>
    %75 = arith.subf %71, %74 : vector<2x8x8xf32>
    %76 = math.exp %75 : vector<2x8x8xf32>
    %cst_17 = arith.constant dense<0.000000e+00> : vector<2x8xf32>
    %77 = vector.multi_reduction <add>, %76, %cst_17 [2] : vector<2x8x8xf32> to vector<2x8xf32>
    %78 = vector.shape_cast %77 : vector<2x8xf32> to vector<2x8x1xf32>
    %79 = tpu.reciprocal %78 {approx = true} : vector<2x8x1xf32> -> vector<2x8x1xf32>
    %80 = vector.broadcast %79 : vector<2x8x1xf32> to vector<2x8x8xf32>
    %81 = arith.mulf %76, %80 : vector<2x8x8xf32>
    %82 = arith.truncf %81 : vector<2x8x8xf32> to vector<2x8x8xbf16>
    %83 = arith.truncf %68 : vector<2x8x8xf32> to vector<2x8x8xbf16>
    "tpu.trace_start"() <{level = 10 : i32, message = "bqk,bkd->bqd"}> : () -> ()
    %cst_18 = arith.constant dense<0.000000e+00> : vector<2x8x8xf32>
    %84 = tpu.matmul %82, %83, %cst_18 {dimension_numbers = #tpu.dot_dimension_numbers<[2], [1], [1], [2], [0, 0, 0, 1, 1, 2], [0], [0]>} : vector<2x8x8xbf16>, vector<2x8x8xbf16>, vector<2x8x8xf32> -> vector<2x8x8xf32>
    "tpu.trace_stop"() : () -> ()
    %85 = vector.extract_strided_slice %18 {offsets = [0, 24], sizes = [16, 8], strides = [1, 1]} : vector<16x96xf32> to vector<16x8xf32>
    %86 = vector.shape_cast %85 : vector<16x8xf32> to vector<2x8x8xf32>
    %87 = vector.extract_strided_slice %18 {offsets = [0, 56], sizes = [16, 8], strides = [1, 1]} : vector<16x96xf32> to vector<16x8xf32>
    %88 = vector.shape_cast %87 : vector<16x8xf32> to vector<2x8x8xf32>
    %89 = vector.extract_strided_slice %18 {offsets = [0, 88], sizes = [16, 8], strides = [1, 1]} : vector<16x96xf32> to vector<16x8xf32>
    %90 = vector.shape_cast %89 : vector<16x8xf32> to vector<2x8x8xf32>
    %91 = arith.truncf %86 : vector<2x8x8xf32> to vector<2x8x8xbf16>
    %92 = arith.truncf %88 : vector<2x8x8xf32> to vector<2x8x8xbf16>
    "tpu.trace_start"() <{level = 10 : i32, message = "bqd,bkd->bqk"}> : () -> ()
    %cst_19 = arith.constant dense<0.000000e+00> : vector<2x8x8xf32>
    %93 = tpu.matmul %91, %92, %cst_19 {dimension_numbers = #tpu.dot_dimension_numbers<[2], [2], [1], [1], [0, 0, 0, 1, 1, 1], [0], [0]>} : vector<2x8x8xbf16>, vector<2x8x8xbf16>, vector<2x8x8xf32> -> vector<2x8x8xf32>
    "tpu.trace_stop"() : () -> ()
    %cst_20 = arith.constant dense<0xFF800000> : vector<2x8xf32>
    %94 = vector.multi_reduction <maximumf>, %93, %cst_20 [2] : vector<2x8x8xf32> to vector<2x8xf32>
    %95 = vector.shape_cast %94 : vector<2x8xf32> to vector<2x8x1xf32>
    %96 = vector.broadcast %95 : vector<2x8x1xf32> to vector<2x8x8xf32>
    %97 = arith.subf %93, %96 : vector<2x8x8xf32>
    %98 = math.exp %97 : vector<2x8x8xf32>
    %cst_21 = arith.constant dense<0.000000e+00> : vector<2x8xf32>
    %99 = vector.multi_reduction <add>, %98, %cst_21 [2] : vector<2x8x8xf32> to vector<2x8xf32>
    %100 = vector.shape_cast %99 : vector<2x8xf32> to vector<2x8x1xf32>
    %101 = tpu.reciprocal %100 {approx = true} : vector<2x8x1xf32> -> vector<2x8x1xf32>
    %102 = vector.broadcast %101 : vector<2x8x1xf32> to vector<2x8x8xf32>
    %103 = arith.mulf %98, %102 : vector<2x8x8xf32>
    %104 = arith.truncf %103 : vector<2x8x8xf32> to vector<2x8x8xbf16>
    %105 = arith.truncf %90 : vector<2x8x8xf32> to vector<2x8x8xbf16>
    "tpu.trace_start"() <{level = 10 : i32, message = "bqk,bkd->bqd"}> : () -> ()
    %cst_22 = arith.constant dense<0.000000e+00> : vector<2x8x8xf32>
    %106 = tpu.matmul %104, %105, %cst_22 {dimension_numbers = #tpu.dot_dimension_numbers<[2], [1], [1], [2], [0, 0, 0, 1, 1, 2], [0], [0]>} : vector<2x8x8xbf16>, vector<2x8x8xbf16>, vector<2x8x8xf32> -> vector<2x8x8xf32>
    "tpu.trace_stop"() : () -> ()
    %107 = tpu.concatenate %40, %62, %84, %106 in 2 : vector<2x8x8xf32>, vector<2x8x8xf32>, vector<2x8x8xf32>, vector<2x8x8xf32> -> vector<2x8x32xf32>
    %108 = vector.shape_cast %107 : vector<2x8x32xf32> to vector<16x32xf32>
    %109 = arith.truncf %108 : vector<16x32xf32> to vector<16x32xbf16>
    %cst_23 = arith.constant dense<0.000000e+00> : vector<16x64xf32>
    %110 = tpu.matmul %109, %12, %cst_23 {dimension_numbers = #tpu.dot_dimension_numbers<[1], [0], [0], [1], [0, 0, 1, 1], [], []>} : vector<16x32xbf16>, vector<32x64xbf16>, vector<16x64xf32> -> vector<16x64xf32>
    %111 = vector.broadcast %3 : vector<1x64xf32> to vector<16x64xf32>
    %112 = arith.addf %110, %111 : vector<16x64xf32>
    %113 = vector.extract_strided_slice %112 {offsets = [0, 0], sizes = [16, 32], strides = [1, 1]} : vector<16x64xf32> to vector<16x32xf32>
    %114 = vector.extract_strided_slice %112 {offsets = [0, 32], sizes = [16, 32], strides = [1, 1]} : vector<16x64xf32> to vector<16x32xf32>
    %115 = arith.negf %114 : vector<16x32xf32>
    %116 = math.exp %115 : vector<16x32xf32>
    %cst_24 = arith.constant 1.000000e+00 : f32
    %117 = vector.broadcast %cst_24 : f32 to vector<16x32xf32>
    %118 = arith.addf %117, %116 : vector<16x32xf32>
    %119 = arith.divf %117, %118 : vector<16x32xf32>
    %120 = arith.mulf %119, %113 : vector<16x32xf32>
    %121 = arith.addf %0, %120 : vector<16x32xf32>
    %cst_25 = arith.constant dense<0.000000e+00> : vector<16xf32>
    %122 = vector.multi_reduction <add>, %121, %cst_25 [1] : vector<16x32xf32> to vector<16xf32>
    %123 = vector.shape_cast %122 : vector<16xf32> to vector<16x1xf32>
    %cst_26 = arith.constant 3.200000e+01 : f32
    %124 = vector.broadcast %cst_26 : f32 to vector<16x1xf32>
    %125 = arith.divf %123, %124 : vector<16x1xf32>
    %126 = vector.broadcast %125 : vector<16x1xf32> to vector<16x32xf32>
    %127 = arith.subf %121, %126 : vector<16x32xf32>
    %128 = arith.mulf %127, %127 : vector<16x32xf32>
    %cst_27 = arith.constant dense<0.000000e+00> : vector<16xf32>
    %129 = vector.multi_reduction <add>, %128, %cst_27 [1] : vector<16x32xf32> to vector<16xf32>
    %130 = vector.shape_cast %129 : vector<16xf32> to vector<16x1xf32>
    %cst_28 = arith.constant 3.200000e+01 : f32
    %131 = vector.broadcast %cst_28 : f32 to vector<16x1xf32>
    %132 = arith.divf %130, %131 : vector<16x1xf32>
    %133 = vector.broadcast %125 : vector<16x1xf32> to vector<16x32xf32>
    %134 = arith.subf %121, %133 : vector<16x32xf32>
    %cst_29 = arith.constant 9.99999974E-6 : f32
    %135 = vector.broadcast %cst_29 : f32 to vector<16x1xf32>
    %136 = arith.addf %132, %135 : vector<16x1xf32>
    %137 = math.rsqrt %136 : vector<16x1xf32>
    %138 = vector.broadcast %137 : vector<16x1xf32> to vector<16x32xf32>
    %139 = arith.mulf %134, %138 : vector<16x32xf32>
    %140 = vector.broadcast %6 : vector<1x32xf32> to vector<16x32xf32>
    %141 = arith.mulf %139, %140 : vector<16x32xf32>
    %142 = vector.broadcast %7 : vector<1x32xf32> to vector<16x32xf32>
    %143 = arith.addf %141, %142 : vector<16x32xf32>
    %144 = arith.truncf %143 : vector<16x32xf32> to vector<16x32xbf16>
    %cst_30 = arith.constant dense<0.000000e+00> : vector<16x64xf32>
    %145 = tpu.matmul %144, %13, %cst_30 {dimension_numbers = #tpu.dot_dimension_numbers<[1], [0], [0], [1], [0, 0, 1, 1], [], []>} : vector<16x32xbf16>, vector<32x64xbf16>, vector<16x64xf32> -> vector<16x64xf32>
    %146 = vector.broadcast %4 : vector<1x64xf32> to vector<16x64xf32>
    %147 = arith.addf %145, %146 : vector<16x64xf32>
    %cst_31 = arith.constant 0.000000e+00 : f32
    %148 = vector.broadcast %cst_31 : f32 to vector<16x64xf32>
    %149 = arith.maximumf %147, %148 : vector<16x64xf32>
    %150 = arith.truncf %149 : vector<16x64xf32> to vector<16x64xbf16>
    %cst_32 = arith.constant dense<0.000000e+00> : vector<16x64xf32>
    %151 = tpu.matmul %150, %14, %cst_32 {dimension_numbers = #tpu.dot_dimension_numbers<[1], [0], [0], [1], [0, 0, 1, 1], [], []>} : vector<16x64xbf16>, vector<64x64xbf16>, vector<16x64xf32> -> vector<16x64xf32>
    %152 = vector.broadcast %5 : vector<1x64xf32> to vector<16x64xf32>
    %153 = arith.addf %151, %152 : vector<16x64xf32>
    %154 = vector.extract_strided_slice %153 {offsets = [0, 0], sizes = [16, 32], strides = [1, 1]} : vector<16x64xf32> to vector<16x32xf32>
    %155 = vector.extract_strided_slice %153 {offsets = [0, 32], sizes = [16, 32], strides = [1, 1]} : vector<16x64xf32> to vector<16x32xf32>
    %156 = arith.negf %155 : vector<16x32xf32>
    %157 = math.exp %156 : vector<16x32xf32>
    %cst_33 = arith.constant 1.000000e+00 : f32
    %158 = vector.broadcast %cst_33 : f32 to vector<16x32xf32>
    %159 = arith.addf %158, %157 : vector<16x32xf32>
    %160 = arith.divf %158, %159 : vector<16x32xf32>
    %161 = arith.mulf %160, %154 : vector<16x32xf32>
    %162 = arith.addf %143, %161 : vector<16x32xf32>
    %cst_34 = arith.constant dense<0.000000e+00> : vector<16xf32>
    %163 = vector.multi_reduction <add>, %162, %cst_34 [1] : vector<16x32xf32> to vector<16xf32>
    %164 = vector.shape_cast %163 : vector<16xf32> to vector<16x1xf32>
    %cst_35 = arith.constant 3.200000e+01 : f32
    %165 = vector.broadcast %cst_35 : f32 to vector<16x1xf32>
    %166 = arith.divf %164, %165 : vector<16x1xf32>
    %167 = vector.broadcast %166 : vector<16x1xf32> to vector<16x32xf32>
    %168 = arith.subf %162, %167 : vector<16x32xf32>
    %169 = arith.mulf %168, %168 : vector<16x32xf32>
    %cst_36 = arith.constant dense<0.000000e+00> : vector<16xf32>
    %170 = vector.multi_reduction <add>, %169, %cst_36 [1] : vector<16x32xf32> to vector<16xf32>
    %171 = vector.shape_cast %170 : vector<16xf32> to vector<16x1xf32>
    %cst_37 = arith.constant 3.200000e+01 : f32
    %172 = vector.broadcast %cst_37 : f32 to vector<16x1xf32>
    %173 = arith.divf %171, %172 : vector<16x1xf32>
    %174 = vector.broadcast %166 : vector<16x1xf32> to vector<16x32xf32>
    %175 = arith.subf %162, %174 : vector<16x32xf32>
    %cst_38 = arith.constant 9.99999974E-6 : f32
    %176 = vector.broadcast %cst_38 : f32 to vector<16x1xf32>
    %177 = arith.addf %173, %176 : vector<16x1xf32>
    %178 = math.rsqrt %177 : vector<16x1xf32>
    %179 = vector.broadcast %178 : vector<16x1xf32> to vector<16x32xf32>
    %180 = arith.mulf %175, %179 : vector<16x32xf32>
    %181 = vector.broadcast %8 : vector<1x32xf32> to vector<16x32xf32>
    %182 = arith.mulf %180, %181 : vector<16x32xf32>
    %183 = vector.broadcast %9 : vector<1x32xf32> to vector<16x32xf32>
    %184 = arith.addf %182, %183 : vector<16x32xf32>
    %c0_39 = arith.constant 0 : index
    %c0_40 = arith.constant 0 : index
    %185 = vector.load %arg4[%c0_39, %c0_40] : memref<16x32xf32, #tpu.memory_space<vmem>>, vector<16x32xf32>
    tpu.vector_store %arg4[%c0_39, %c0_40], %184 {strides = array<i32>} : memref<16x32xf32, #tpu.memory_space<vmem>>, vector<16x32xf32>,
    return
  }
}

</mosaic_0001>

<bundles_post_ra>
// kernel: encoder_layer.1
= control target key start
LH: loop header
LB: loop body
LE: loop exit
PB: predicated region body
PF: predicated region fallthrough
CT: control target
= control target key end

     0   :  { %9 = vsyncpa [#allocation3], 0  ;;  %s2148_s0 = inlined_call_operand.hbm [shape: f32[16,32], index: 0, kind: input, shape index: {}]   ;;  %s2149_s1 = inlined_call_operand.hbm [shape: bf16[32,384], index: 1, kind: input, shape index: {}]   ;;  %s2150_s2 = inlined_call_operand.hbm [shape: bf16[64,64], index: 2, kind: input, shape index: {}]   ;;  %s2151_s3 = inlined_call_operand.vmem [shape: f32[8,128], index: 3, kind: input, shape index: {}]   ;;  %s2152_s4 = inlined_call_operand.hbm [shape: f32[16,32], index: 4, kind: output, shape index: {}]  }
   0x1   :  { %10 = vsyncpa [#allocation6], 0 }
   0x2   :  { %11 = vsyncpa [#allocation4], 0  ;;  %s1825_s15 = smov [#allocation5]   ;;  %s1731_s19 = scalar_lea.hbm %s2149_s1, 768 }
   0x3   :  { %s29_s16 = sshll.u32 %s1825_s15, 4  ;;  %p1732_p0 = scmp.ne.s32.totalorder %s2149_s1, %s1731_s19  ;;  %s30_s16 = int_to_ptr.vmem [resolvable:$true] %s29_s16 }
   0x4   :  { %p1735_p1 = scmp.lt.u32.totalorder %s1731_s19, %s2149_s1 }
   0x6   :  { %p1737_p2 = pnand %p1735_p1, %p1732_p0 }
   0x8   :  { %1740 = shalt.err (!%p1737_p2)
}
   0x9   :  { %s1741_s24 = scalar_lea.vmem %s30_s16, 768  ;;  %p1746_p4 = scmp.lt.s32.totalorder %s30_s16, %s30_s16 }
   0xa   :  { %p1742_p3 = scmp.ne.s32.totalorder %s30_s16, %s1741_s24  ;;  %p1747_p5 = scmp.lt.s32.totalorder %s1741_s24, %s1741_s24 }
   0xc   :  { %p1748_p6 = por %p1747_p5, %p1746_p4 }
   0xe   :  { %p1749_p7 = pnand %p1748_p6, %p1742_p3 }
  0x10   :  { %1752 = shalt.err (!%p1749_p7)
}
  0x11   :  { %s1826_s25 = smov 192   ;;  %s1827_s26 = smov 12  }
  0x12   :  { %35 = dma.hbm_to_vmem [thread:$0]  %s2149_s1, 768, %s30_s16, [#allocation6], %s1826_s25, %s1826_s25, %s1827_s26  }
  0x13   :  { %s1828_s29 = smov [#allocation2]   ;;  %s1753_s7 = scalar_lea.hbm %s2148_s0, 256 }
  0x14   :  { %s17_s30 = sshll.u32 %s1828_s29, 4  ;;  %p1754_p8 = scmp.ne.s32.totalorder %s2148_s0, %s1753_s7  ;;  %s18_s30 = int_to_ptr.vmem [resolvable:$true] %s17_s30 }
  0x15   :  { %p1757_p9 = scmp.lt.u32.totalorder %s1753_s7, %s2148_s0 }
  0x17   :  { %p1759_p10 = pnand %p1757_p9, %p1754_p8 }
  0x19   :  { %1762 = shalt.err (!%p1759_p10)
}
  0x1a   :  { %s1763_s12 = scalar_lea.vmem %s18_s30, 256  ;;  %p1768_p12 = scmp.lt.s32.totalorder %s18_s30, %s18_s30 }
  0x1b   :  { %p1764_p11 = scmp.ne.s32.totalorder %s18_s30, %s1763_s12  ;;  %p1769_p13 = scmp.lt.s32.totalorder %s1763_s12, %s1763_s12 }
  0x1d   :  { %p1770_p0 = por %p1769_p13, %p1768_p12 }
  0x1f   :  { %p1771_p1 = pnand %p1770_p0, %p1764_p11 }
  0x21   :  { %1774 = shalt.err (!%p1771_p1)
}
  0x22   :  { %s1829_s1 = smov 128   ;;  %s1830_s13 = smov 8  }
  0x23   :  { %23 = dma.hbm_to_vmem [thread:$0]  %s2148_s0, 256, %s18_s30, [#allocation3], %s1829_s1, %s1829_s1, %s1830_s13  }
  0x24   :  { %s1831_s16 = smov [#allocation7]   ;;  %s1775_s20 = scalar_lea.hbm %s2150_s2, 512 }
  0x25   :  { %s41_s17 = sshll.u32 %s1831_s16, 4  ;;  %p1776_p2 = scmp.ne.s32.totalorder %s2150_s2, %s1775_s20  ;;  %s42_s17 = int_to_ptr.vmem [resolvable:$true] %s41_s17 }
  0x26   :  { %p1779_p3 = scmp.lt.u32.totalorder %s1775_s20, %s2150_s2 }
  0x28   :  { %p1781_p4 = pnand %p1779_p3, %p1776_p2 }
  0x2a   :  { %1784 = shalt.err (!%p1781_p4)
}
  0x2b   :  { %s1785_s25 = scalar_lea.vmem %s42_s17, 512  ;;  %p1790_p6 = scmp.lt.s32.totalorder %s42_s17, %s42_s17 }
  0x2c   :  { %p1786_p5 = scmp.ne.s32.totalorder %s42_s17, %s1785_s25  ;;  %p1791_p7 = scmp.lt.s32.totalorder %s1785_s25, %s1785_s25 }
  0x2e   :  { %p1792_p8 = por %p1791_p7, %p1790_p6 }
  0x30   :  { %p1793_p9 = pnand %p1792_p8, %p1786_p5 }
  0x32   :  { %1796 = shalt.err (!%p1793_p9)
}
  0x33   :  { %s1832_s0 = smov 64   ;;  %s1833_s26 = smov 4  }
  0x34   :  { %47 = dma.hbm_to_vmem [thread:$0]  %s2150_s2, 512, %s42_s17, [#allocation6], %s1832_s0, %s1832_s0, %s1833_s26  }
  0x35   :  { %1819 = dma.done.wait [#allocation3], 256  }
  0x36   :  { %1820 = vsyncadd [#allocation3], 4294967040 }
  0x37   :  { %1821 = dma.done.wait [#allocation6], 1280  }
  0x38   :  { %1822 = vsyncadd [#allocation6], 4294966016  ;;  %v1834_v0 = vmov 0.0   ;;  %vm1835_vm0 = vmmov 0   ;;  %v1662_v1 = vld [vmem:[#allocation5] ss:$12 sps:$4 sm:$0xff]   ;;  %v80_v6 = vlaneseq }
  0x39   :  { %1490 = vmatprep.subr.bf16.mxu0 %v1834_v0  ;;  %1494 = vmatprep.mubr.msk.bf16.mxu0 %vm1835_vm0, %v1834_v0  ;;  %v1665_v2 = vld [vmem:[#allocation5 + $0x18] ss:$12 sps:$4 sm:$0xff]   ;;  %v1922_v3 = vld [vmem:[#allocation2] sm:$0xff]  ;;  %vm96_vm1 = vcmask 261120   ;;  %s1836_s30 = smov 96   ;;  %vm146_vm2 = vcmask 64512  }
  0x3a   :  { %1498 = vmatprep.subr.bf16.mxu1 %v1834_v0  ;;  %1500 = vmatprep.mubr.msk.bf16.mxu1 %vm1835_vm0, %v1834_v0  ;;  %v1925_v4 = vld [vmem:[#allocation2 + $0x8] sm:$0xff]  ;;  %v1933_v7 = vshrl.u32 %v80_v6, 7  ;;  %v1939_v9 = vld [vmem:[%s2151_s3] sm:$0xff]  ;;  %s1837_s5 = smov 88   ;;  %vm271_vm3 = vcmask 1043456   ;;  %s1838_s6 = smov 120  }
  0x3b   :  { %1491 = vmatpush3.bf16.msra.mxu0 %v1662_v1  ;;  %v79_v5 = vpack.c.bf16 %v1925_v4, %v1922_v3  ;;  %s1839_s7 = smov 56   ;;  %s1840_s8 = smov 80   ;;  %vm1049_vm4 = vcmask 130048   ;;  %vm1052_vm5 = vcmask 195584   ;;  %vm1275_vm6 = vcmask 523264  }
  0x3c   :  { %1492 = vmatprep.subr.bf16.mxu0 %v1834_v0  ;;  %v82_v8 = vsub.s32 0, %v1933_v7  ;;  %s1841_s9 = smov 112   ;;  %s1842_s10 = smov 48  }
  0x3d   :  { %s1843_s11 = smov 72   ;;  %s1844_s12 = smov 104  }
  0x3e   :  { %v83_v10 = vrot.slane %v1939_v9, %v82_v8  ;;  %s1845_s14 = smov 40   ;;  %s1846_s15 = smov 16  }
  0x3f   :  { %1493 = vmatpush3.bf16.msra.mxu0 %v1665_v2  ;;  %s1847_s16 = smov 24   ;;  %s1848_s17 = smov 32  }
  0x40   :  { %1504 = vmatprep.subr.bf16.mxu0 %v1834_v0  ;;  %s1849_s20 = smov [#allocation8]  }
  0x41   :  { %s1397_s21 = sshll.u32 %s1849_s20, 4  ;;  %s1398_s21 = int_to_ptr.vmem [resolvable:$true] %s1397_s21 }
  0x42   :  { %1495 = vmatmul.mubr.msk.bf16.vlgmr.msra.gmra.mrb[0].mxu0 %vm96_vm1, %v79_v5  ;;  %s1797_s22 = scalar_lea.vmem %s1398_s21, 256  ;;  %p1802_p11 = scmp.lt.s32.totalorder %s1398_s21, %s1398_s21 }
  0x43   :  { %1506 = vmatprep.mubr.msk.bf16.mxu0 %vm1835_vm0, %v1834_v0  ;;  %p1798_p10 = scmp.ne.s32.totalorder %s1398_s21, %s1797_s22  ;;  %p1803_p12 = scmp.lt.s32.totalorder %s1797_s22, %s1797_s22 }
  0x45   :  { %p1804_p13 = por %p1803_p12, %p1802_p11 }
  0x47   :  { %p1805_p0 = pnand %p1804_p13, %p1798_p10 }
 0x115   :  { %v134_v11 = vpop.f32.mrb[0].mxu0 }
 0x116   :  { %v135_v12 = vadd.f32 %v134_v11, %v83_v10  ;;  %v1496_v13 = vpop.f32.mrb[1].mxu0 }
 0x117   :  { %v137_v14 = vpop.f32.mrb[2].mxu0 }
 0x118   :  { %v1942_v15 = vpack.c.bf16 %v135_v12, %v135_v12  ;;  %v138_v16 = vadd.f32 %v137_v14, %v83_v10  ;;  %v1497_v17 = vpop.f32.mrb[3].mxu0 }
 0x11a   :  { %144 = vrot.lane.b32.xlu0 %v1942_v15, %s1836_s30  ;;  %v1946_v18 = vpack.c.bf16 %v138_v16, %v138_v16 }
 0x11e   :  { %194 = vrot.lane.b32.xlu0 %v1946_v18, %s1836_s30 }
 0x18c   :  { %v145_v19 = vpop.permute.xlu0 %144 }
 0x18d   :  { %v151_v20 = vsel %vm146_vm2, %v145_v19, 0 }
 0x18e   :  { %1499 = vmatpush3.bf16.xpose.msra.mxu1 %v151_v20 }
 0x18f   :  { %1510 = vmatprep.subr.bf16.mxu1 %v1834_v0 }
 0x190   :  { %v195_v21 = vpop.permute.xlu0 %194 }
 0x191   :  { %v200_v22 = vsel %vm146_vm2, %v195_v21, 0 }
 0x192   :  { %1505 = vmatpush3.bf16.xpose.msra.mxu0 %v200_v22 }
 0x193   :  { %1516 = vmatprep.subr.bf16.mxu0 %v1834_v0 }
 0x195   :  { %1501 = vmatmul.mubr.msk.bf16.vlgmr.msra.gmra.mrb[0].mxu1 %vm146_vm2, %v1942_v15 }
 0x196   :  { %1512 = vmatprep.mubr.msk.bf16.mxu1 %vm1835_vm0, %v1834_v0 }
 0x199   :  { %1507 = vmatmul.mubr.msk.bf16.vlgmr.msra.gmra.mrb[4].mxu0 %vm146_vm2, %v1946_v18 }
 0x19a   :  { %1518 = vmatprep.mubr.msk.bf16.mxu0 %vm1835_vm0, %v1834_v0 }
 0x268   :  { %v187_v23 = vpop.f32.mrb[0].mxu1 }
 0x269   :  { %v1502_v24 = vpop.f32.mrb[1].mxu1  ;;  %v242_v25 = vsel %vm146_vm2, %v187_v23, -inf }
 0x26a   :  { %243 = vmax.xlane.f32.xlu1 %v242_v25  ;;  %v190_v26 = vpop.f32.mrb[2].mxu1 }
 0x26b   :  { %v1503_v27 = vpop.f32.mrb[3].mxu1 }
 0x26c   :  { %v236_v28 = vpop.f32.mrb[4].mxu0 }
 0x26d   :  { %v1508_v29 = vpop.f32.mrb[5].mxu0  ;;  %v245_v30 = vsel %vm146_vm2, %v236_v28, -inf }
 0x26e   :  { %246 = vmax.xlane.f32.xlu1 %v245_v30  ;;  %v239_v31 = vpop.f32.mrb[6].mxu0 }
 0x26f   :  { %v1509_v32 = vpop.f32.mrb[7].mxu0 }
 0x27f   :  { %266 = vrot.lane.b32.xlu1 %v1942_v15, %s1832_s0 }
 0x283   :  { %315 = vrot.lane.b32.xlu1 %v1946_v18, %s1832_s0 }
 0x287   :  { %365 = vrot.lane.b32.xlu1 %v1942_v15, %s1837_s5 }
 0x2f7   :  { %v244_v33 = vpop.xlane.xlu1 %243 }
 0x2f8   :  { %v248_v34 = vsub.f32 %v187_v23, %v244_v33 }
 0x2fa   :  { %v250_v35 = vmul.f32 1.442695, %v248_v34 }
 0x2fb   :  { %v247_v36 = vpop.xlane.xlu1 %246 }
 0x2fc   :  { %1674 = vpow2.f32 %v250_v35  ;;  %v249_v37 = vsub.f32 %v236_v28, %v247_v36 }
 0x2fe   :  { %v252_v38 = vmul.f32 1.442695, %v249_v37 }
 0x2ff   :  { %v267_v39 = vpop.permute.xlu1 %266 }
 0x300   :  { %1676 = vpow2.f32 %v252_v38  ;;  %v273_v40 = vsel %vm271_vm3, %v267_v39, 0 }
 0x301   :  { %1511 = vmatpush3.bf16.msra.mxu1 %v273_v40 }
 0x302   :  { %1522 = vmatprep.subr.bf16.mxu1 %v1834_v0 }
 0x303   :  { %v316_v41 = vpop.permute.xlu1 %315 }
 0x304   :  { %v321_v42 = vsel %vm271_vm3, %v316_v41, 0 }
 0x305   :  { %1517 = vmatpush3.bf16.msra.mxu0 %v321_v42 }
 0x306   :  { %v1675_v43 = vpop.eup %1674  ;;  %1528 = vmatprep.subr.bf16.mxu0 %v1834_v0 }
 0x307   :  { %v254_v44 = vsel %vm146_vm2, %v1675_v43, 0.0  ;;  %v366_v47 = vpop.permute.xlu1 %365 }
 0x308   :  { %255 = vadd.xlane.f32.xlu0 %v254_v44  ;;  %v371_v54 = vsel %vm146_vm2, %v366_v47, 0 }
 0x30a   :  { %v1677_v45 = vpop.eup %1676 }
 0x30b   :  { %v257_v46 = vsel %vm146_vm2, %v1677_v45, 0.0 }
 0x30c   :  { %258 = vadd.xlane.f32.xlu1 %v257_v46 }
 0x31d   :  { %415 = vrot.lane.b32.xlu1 %v1946_v18, %s1837_s5 }
 0x31e   :  { %363 = vrot.lane.b32.xlu0 %v1942_v15, %s1838_s6 }
 0x321   :  { %413 = vrot.lane.b32.xlu1 %v1946_v18, %s1838_s6 }
 0x395   :  { %v256_v48 = vpop.xlane.xlu0 %255 }
 0x396   :  { %1678 = vrcp.f32 %v256_v48 }
 0x399   :  { %v259_v49 = vpop.xlane.xlu1 %258  ;;  %v364_v59 = vpop.permute.xlu0 %363 }
 0x39a   :  { %1680 = vrcp.f32 %v259_v49 }
 0x39d   :  { %v416_v56 = vpop.permute.xlu1 %415 }
 0x39e   :  { %v421_v58 = vsel %vm146_vm2, %v416_v56, 0 }
 0x3a0   :  { %v1679_v50 = vpop.eup %1678 }
 0x3a1   :  { %v262_v51 = vmul.f32 %v1679_v50, %v1675_v43  ;;  %v414_v60 = vpop.permute.xlu1 %413 }
 0x3a3   :  { %v264_v52 = vpack.c.bf16 %v262_v51, %v262_v51 }
 0x3a4   :  { %v1681_v53 = vpop.eup %1680 }
 0x3a5   :  { %v263_v55 = vmul.f32 %v1681_v53, %v1677_v45  ;;  %1513 = vmatmul.mubr.msk.bf16.vlgmr.msra.gmra.mrb[4].mxu1 %vm146_vm2, %v264_v52 }
 0x3a6   :  { %1523 = vmatpush3.bf16.xpose.msra.mxu1 %v371_v54  ;;  %1524 = vmatprep.mubr.msk.bf16.mxu1 %vm1835_vm0, %v1834_v0 }
 0x3a7   :  { %v265_v57 = vpack.c.bf16 %v263_v55, %v263_v55  ;;  %1534 = vmatprep.subr.bf16.mxu1 %v1834_v0 }
 0x3a9   :  { %1519 = vmatmul.mubr.msk.bf16.vlgmr.msra.gmra.mrb[8].mxu0 %vm146_vm2, %v265_v57 }
 0x3aa   :  { %1529 = vmatpush3.bf16.xpose.msra.mxu0 %v421_v58  ;;  %1530 = vmatprep.mubr.msk.bf16.mxu0 %vm1835_vm0, %v1834_v0 }
 0x3ab   :  { %1540 = vmatprep.subr.bf16.mxu0 %v1834_v0 }
 0x3ad   :  { %1525 = vmatmul.mubr.msk.bf16.vlgmr.msra.gmra.mrb[8].mxu1 %vm146_vm2, %v364_v59 }
 0x3ae   :  { %1536 = vmatprep.mubr.msk.bf16.mxu1 %vm1835_vm0, %v1834_v0 }
 0x3b1   :  { %1531 = vmatmul.mubr.msk.bf16.vlgmr.msra.gmra.mrb[12].mxu0 %vm146_vm2, %v414_v60 }
 0x3b2   :  { %1542 = vmatprep.mubr.msk.bf16.mxu0 %vm1835_vm0, %v1834_v0 }
 0x478   :  { %v1994_v61 = vpop.f32.mrb[4].mxu1 }
 0x479   :  { %v1514_v62 = vpop.f32.mrb[5].mxu1 }
 0x47a   :  { %v312_v63 = vpop.f32.mrb[6].mxu1 }
 0x47b   :  { %v1515_v1 = vpop.f32.mrb[7].mxu1 }
 0x47c   :  { %v1996_v2 = vpop.f32.mrb[8].mxu0 }
 0x47d   :  { %v1520_v5 = vpop.f32.mrb[9].mxu0 }
 0x47e   :  { %v360_v6 = vpop.f32.mrb[10].mxu0 }
 0x47f   :  { %v1521_v8 = vpop.f32.mrb[11].mxu0 }
 0x480   :  { %v407_v10 = vpop.f32.mrb[8].mxu1 }
 0x481   :  { %v1526_v11 = vpop.f32.mrb[9].mxu1  ;;  %v463_v12 = vsel %vm146_vm2, %v407_v10, -inf }
 0x482   :  { %464 = vmax.xlane.f32.xlu1 %v463_v12  ;;  %v410_v13 = vpop.f32.mrb[10].mxu1 }
 0x483   :  { %v1527_v14 = vpop.f32.mrb[11].mxu1 }
 0x484   :  { %v457_v16 = vpop.f32.mrb[12].mxu0 }
 0x485   :  { %v1532_v17 = vpop.f32.mrb[13].mxu0  ;;  %v466_v19 = vsel %vm146_vm2, %v457_v16, -inf }
 0x486   :  { %467 = vmax.xlane.f32.xlu0 %v466_v19  ;;  %v460_v20 = vpop.f32.mrb[14].mxu0 }
 0x487   :  { %v1533_v21 = vpop.f32.mrb[15].mxu0 }
 0x493   :  { %487 = vrot.lane.b32.xlu1 %v1942_v15, %s1839_s7 }
 0x497   :  { %585 = vrot.lane.b32.xlu1 %v1942_v15, %s1840_s8 }
 0x49c   :  { %535 = vrot.lane.b32.xlu0 %v1946_v18, %s1839_s7 }
 0x4a0   :  { %583 = vrot.lane.b32.xlu0 %v1942_v15, %s1841_s9 }
 0x50f   :  { %v465_v22 = vpop.xlane.xlu1 %464 }
 0x510   :  { %v469_v23 = vsub.f32 %v407_v10, %v465_v22 }
 0x512   :  { %v471_v24 = vmul.f32 1.442695, %v469_v23 }
 0x513   :  { %v488_v25 = vpop.permute.xlu1 %487  ;;  %v468_v26 = vpop.xlane.xlu0 %467 }
 0x514   :  { %1682 = vpow2.f32 %v471_v24  ;;  %v493_v27 = vsel %vm271_vm3, %v488_v25, 0  ;;  %v470_v28 = vsub.f32 %v457_v16, %v468_v26 }
 0x515   :  { %1535 = vmatpush3.bf16.msra.mxu1 %v493_v27 }
 0x516   :  { %v473_v29 = vmul.f32 1.442695, %v470_v28  ;;  %1546 = vmatprep.subr.bf16.mxu1 %v1834_v0 }
 0x517   :  { %v536_v30 = vpop.permute.xlu0 %535  ;;  %v586_v36 = vpop.permute.xlu1 %585 }
 0x518   :  { %1684 = vpow2.f32 %v473_v29  ;;  %v541_v31 = vsel %vm271_vm3, %v536_v30, 0  ;;  %v591_v43 = vsel %vm146_vm2, %v586_v36, 0 }
 0x519   :  { %1541 = vmatpush3.bf16.msra.mxu0 %v541_v31 }
 0x51a   :  { %1552 = vmatprep.subr.bf16.mxu0 %v1834_v0 }
 0x51b   :  { %v584_v48 = vpop.permute.xlu0 %583 }
 0x51e   :  { %v1683_v32 = vpop.eup %1682 }
 0x51f   :  { %v475_v33 = vsel %vm146_vm2, %v1683_v32, 0.0 }
 0x520   :  { %476 = vadd.xlane.f32.xlu1 %v475_v33 }
 0x522   :  { %v1685_v34 = vpop.eup %1684 }
 0x523   :  { %v478_v35 = vsel %vm146_vm2, %v1685_v34, 0.0 }
 0x524   :  { %479 = vadd.xlane.f32.xlu1 %v478_v35 }
 0x535   :  { %635 = vrot.lane.b32.xlu1 %v1946_v18, %s1840_s8 }
 0x539   :  { %633 = vrot.lane.b32.xlu1 %v1946_v18, %s1841_s9 }
 0x5ad   :  { %v477_v37 = vpop.xlane.xlu1 %476 }
 0x5ae   :  { %1686 = vrcp.f32 %v477_v37 }
 0x5b1   :  { %v480_v38 = vpop.xlane.xlu1 %479 }
 0x5b2   :  { %1688 = vrcp.f32 %v480_v38 }
 0x5b5   :  { %v636_v45 = vpop.permute.xlu1 %635 }
 0x5b6   :  { %v641_v47 = vsel %vm146_vm2, %v636_v45, 0 }
 0x5b8   :  { %v1687_v39 = vpop.eup %1686 }
 0x5b9   :  { %v483_v40 = vmul.f32 %v1687_v39, %v1683_v32  ;;  %v634_v49 = vpop.permute.xlu1 %633 }
 0x5bb   :  { %v485_v41 = vpack.c.bf16 %v483_v40, %v483_v40 }
 0x5bc   :  { %v1689_v42 = vpop.eup %1688 }
 0x5bd   :  { %v484_v44 = vmul.f32 %v1689_v42, %v1685_v34  ;;  %1537 = vmatmul.mubr.msk.bf16.vlgmr.msra.gmra.mrb[12].mxu1 %vm146_vm2, %v485_v41 }
 0x5be   :  { %1547 = vmatpush3.bf16.xpose.msra.mxu1 %v591_v43  ;;  %1548 = vmatprep.mubr.msk.bf16.mxu1 %vm1835_vm0, %v1834_v0 }
 0x5bf   :  { %v486_v46 = vpack.c.bf16 %v484_v44, %v484_v44  ;;  %1558 = vmatprep.subr.bf16.mxu1 %v1834_v0 }
 0x5c1   :  { %1543 = vmatmul.mubr.msk.bf16.vlgmr.msra.gmra.mrb[16].mxu0 %vm146_vm2, %v486_v46 }
 0x5c2   :  { %1553 = vmatpush3.bf16.xpose.msra.mxu0 %v641_v47  ;;  %1554 = vmatprep.mubr.msk.bf16.mxu0 %vm1835_vm0, %v1834_v0 }
 0x5c3   :  { %1564 = vmatprep.subr.bf16.mxu0 %v1834_v0 }
 0x5c5   :  { %1549 = vmatmul.mubr.msk.bf16.vlgmr.msra.gmra.mrb[16].mxu1 %vm146_vm2, %v584_v48 }
 0x5c6   :  { %1560 = vmatprep.mubr.msk.bf16.mxu1 %vm1835_vm0, %v1834_v0 }
 0x5c9   :  { %1555 = vmatmul.mubr.msk.bf16.vlgmr.msra.gmra.mrb[20].mxu0 %vm146_vm2, %v634_v49 }
 0x5ca   :  { %1566 = vmatprep.mubr.msk.bf16.mxu0 %vm1835_vm0, %v1834_v0 }
 0x690   :  { %v2028_v50 = vpop.f32.mrb[12].mxu1 }
 0x691   :  { %v1538_v51 = vpop.f32.mrb[13].mxu1 }
 0x692   :  { %v532_v52 = vpop.f32.mrb[14].mxu1 }
 0x693   :  { %v1539_v53 = vpop.f32.mrb[15].mxu1 }
 0x694   :  { %v2030_v54 = vpop.f32.mrb[16].mxu0 }
 0x695   :  { %v1647_v55 = vpack.i.bf16 %v2030_v54, %v2028_v50  ;;  %v1544_v56 = vpop.f32.mrb[17].mxu0 }
 0x696   :  { %v580_v57 = vpop.f32.mrb[18].mxu0 }
 0x697   :  { %v1545_v58 = vpop.f32.mrb[19].mxu0 }
 0x698   :  { %v627_v59 = vpop.f32.mrb[16].mxu1 }
 0x699   :  { %v1550_v60 = vpop.f32.mrb[17].mxu1  ;;  %v683_v62 = vsel %vm146_vm2, %v627_v59, -inf }
 0x69a   :  { %684 = vmax.xlane.f32.xlu0 %v683_v62  ;;  %v630_v63 = vpop.f32.mrb[18].mxu1 }
 0x69b   :  { %v1551_v1 = vpop.f32.mrb[19].mxu1 }
 0x69c   :  { %v677_v5 = vpop.f32.mrb[20].mxu0 }
 0x69d   :  { %v1556_v6 = vpop.f32.mrb[21].mxu0  ;;  %v686_v8 = vsel %vm146_vm2, %v677_v5, -inf }
 0x69e   :  { %687 = vmax.xlane.f32.xlu1 %v686_v8  ;;  %v680_v10 = vpop.f32.mrb[22].mxu0 }
 0x69f   :  { %v1557_v11 = vpop.f32.mrb[23].mxu0 }
 0x6af   :  { %707 = vrot.lane.b32.xlu1 %v1942_v15, %s1842_s10 }
 0x6b3   :  { %805 = vrot.lane.b32.xlu1 %v1942_v15, %s1843_s11 }
 0x6b7   :  { %855 = vrot.lane.b32.xlu1 %v1946_v18, %s1843_s11 }
 0x6bb   :  { %853 = vrot.lane.b32.xlu1 %v1946_v18, %s1844_s12 }
 0x727   :  { %v685_v12 = vpop.xlane.xlu0 %684 }
 0x728   :  { %v689_v13 = vsub.f32 %v627_v59, %v685_v12 }
 0x72a   :  { %v691_v14 = vmul.f32 1.442695, %v689_v13 }
 0x72b   :  { %v688_v16 = vpop.xlane.xlu1 %687 }
 0x72c   :  { %1690 = vpow2.f32 %v691_v14  ;;  %v690_v17 = vsub.f32 %v677_v5, %v688_v16 }
 0x72e   :  { %v693_v19 = vmul.f32 1.442695, %v690_v17 }
 0x72f   :  { %v708_v20 = vpop.permute.xlu1 %707 }
 0x730   :  { %1692 = vpow2.f32 %v693_v19  ;;  %v713_v21 = vsel %vm271_vm3, %v708_v20, 0 }
 0x731   :  { %1559 = vmatpush3.bf16.msra.mxu1 %v713_v21 }
 0x732   :  { %1570 = vmatprep.subr.bf16.mxu1 %v1834_v0 }
 0x733   :  { %v806_v31 = vpop.permute.xlu1 %805 }
 0x734   :  { %v811_v35 = vsel %vm146_vm2, %v806_v31, 0 }
 0x736   :  { %v1691_v22 = vpop.eup %1690 }
 0x737   :  { %v695_v23 = vsel %vm146_vm2, %v1691_v22, 0.0  ;;  %v856_v37 = vpop.permute.xlu1 %855 }
 0x738   :  { %696 = vadd.xlane.f32.xlu0 %v695_v23  ;;  %v861_v39 = vsel %vm146_vm2, %v856_v37, 0  ;;  %v1664_v23 = vld [vmem:[#allocation5 + $0x4] ss:$12 sps:$4 sm:$0xff]  }
 0x73a   :  { %v1693_v24 = vpop.eup %1692 }
 0x73b   :  { %v698_v25 = vsel %vm146_vm2, %v1693_v24, 0.0  ;;  %v854_v41 = vpop.permute.xlu1 %853 }
 0x73c   :  { %699 = vadd.xlane.f32.xlu0 %v698_v25 }
 0x752   :  { %755 = vrot.lane.b32.xlu0 %v1946_v18, %s1842_s10 }
 0x756   :  { %803 = vrot.lane.b32.xlu0 %v1942_v15, %s1844_s12 }
 0x7c5   :  { %v697_v26 = vpop.xlane.xlu0 %696 }
 0x7c6   :  { %1694 = vrcp.f32 %v697_v26 }
 0x7c9   :  { %v700_v27 = vpop.xlane.xlu0 %699 }
 0x7ca   :  { %1696 = vrcp.f32 %v700_v27  ;;  %v1667_v27 = vld [vmem:[#allocation5 + $0x1c] ss:$12 sps:$4 sm:$0xff]  }
 0x7cd   :  { %v756_v28 = vpop.permute.xlu0 %755 }
 0x7ce   :  { %v761_v29 = vsel %vm271_vm3, %v756_v28, 0 }
 0x7cf   :  { %1565 = vmatpush3.bf16.msra.mxu0 %v761_v29 }
 0x7d0   :  { %v1695_v30 = vpop.eup %1694  ;;  %1576 = vmatprep.subr.bf16.mxu0 %v1834_v0 }
 0x7d1   :  { %v703_v32 = vmul.f32 %v1695_v30, %v1691_v22  ;;  %v804_v40 = vpop.permute.xlu0 %803 }
 0x7d3   :  { %v705_v33 = vpack.c.bf16 %v703_v32, %v703_v32 }
 0x7d4   :  { %v1697_v34 = vpop.eup %1696 }
 0x7d5   :  { %v704_v36 = vmul.f32 %v1697_v34, %v1693_v24  ;;  %1561 = vmatmul.mubr.msk.bf16.vlgmr.msra.gmra.mrb[20].mxu1 %vm146_vm2, %v705_v33 }
 0x7d6   :  { %1571 = vmatpush3.bf16.xpose.msra.mxu1 %v811_v35  ;;  %1572 = vmatprep.mubr.msk.bf16.mxu1 %vm1835_vm0, %v1834_v0 }
 0x7d7   :  { %v706_v38 = vpack.c.bf16 %v704_v36, %v704_v36  ;;  %1582 = vmatprep.subr.bf16.mxu1 %v1834_v0 }
 0x7d9   :  { %1567 = vmatmul.mubr.msk.bf16.vlgmr.msra.gmra.mrb[24].mxu0 %vm146_vm2, %v706_v38 }
 0x7da   :  { %1577 = vmatpush3.bf16.xpose.msra.mxu0 %v861_v39  ;;  %1578 = vmatprep.mubr.msk.bf16.mxu0 %vm1835_vm0, %v1834_v0 }
 0x7db   :  { %1588 = vmatprep.subr.bf16.mxu0 %v1834_v0 }
 0x7dd   :  { %1573 = vmatmul.mubr.msk.bf16.vlgmr.msra.gmra.mrb[24].mxu1 %vm146_vm2, %v804_v40 }
 0x7de   :  { %1584 = vmatprep.mubr.msk.bf16.mxu1 %vm1835_vm0, %v1834_v0 }
 0x7e1   :  { %1579 = vmatmul.mubr.msk.bf16.vlgmr.msra.gmra.mrb[28].mxu0 %vm146_vm2, %v854_v41 }
 0x7e2   :  { %1590 = vmatprep.mubr.msk.bf16.mxu0 %vm1835_vm0, %v1834_v0 }
 0x8a8   :  { %v749_v42 = vpop.f32.mrb[20].mxu1 }
 0x8a9   :  { %v1562_v43 = vpop.f32.mrb[21].mxu1 }
 0x8aa   :  { %v752_v44 = vpop.f32.mrb[22].mxu1 }
 0x8ab   :  { %v1563_v45 = vpop.f32.mrb[23].mxu1 }
 0x8ac   :  { %v797_v46 = vpop.f32.mrb[24].mxu0 }
 0x8ad   :  { %v1652_v47 = vpack.i.bf16 %v797_v46, %v749_v42  ;;  %v1568_v48 = vpop.f32.mrb[25].mxu0 }
 0x8ae   :  { %v800_v49 = vpop.f32.mrb[26].mxu0 }
 0x8af   :  { %v1569_v51 = vpop.f32.mrb[27].mxu0 }
 0x8b0   :  { %v847_v52 = vpop.f32.mrb[24].mxu1 }
 0x8b1   :  { %v1574_v53 = vpop.f32.mrb[25].mxu1  ;;  %v903_v56 = vsel %vm146_vm2, %v847_v52, -inf }
 0x8b2   :  { %904 = vmax.xlane.f32.xlu0 %v903_v56  ;;  %v850_v57 = vpop.f32.mrb[26].mxu1  ;;  %v1058_v56 = vsub.s32 1, %v1933_v7 }
 0x8b3   :  { %v1575_v58 = vpop.f32.mrb[27].mxu1 }
 0x8b4   :  { %v897_v59 = vpop.f32.mrb[28].mxu0  ;;  %v1059_v57 = vrot.slane %v1939_v9, %v1058_v56  ;;  %v1186_v56 = vsub.s32 2, %v1933_v7 }
 0x8b5   :  { %v1580_v60 = vpop.f32.mrb[29].mxu0  ;;  %v906_v62 = vsel %vm146_vm2, %v897_v59, -inf }
 0x8b6   :  { %907 = vmax.xlane.f32.xlu1 %v906_v62  ;;  %v900_v63 = vpop.f32.mrb[30].mxu0 }
 0x8b7   :  { %v1581_v1 = vpop.f32.mrb[31].mxu0 }
 0x8c7   :  { %927 = vrot.lane.b32.xlu1 %v1942_v15, %s1845_s14 }
 0x8cb   :  { %1648 = vrot.lane.b32.xlu1 %v1647_v55, %s1830_s13 }
 0x8cf   :  { %1653 = vrot.lane.b32.xlu1 %v1652_v47, %s1846_s15 }
 0x93f   :  { %v905_v5 = vpop.xlane.xlu0 %904 }
 0x940   :  { %v909_v6 = vsub.f32 %v847_v52, %v905_v5 }
 0x942   :  { %v911_v8 = vmul.f32 1.442695, %v909_v6 }
 0x943   :  { %v908_v10 = vpop.xlane.xlu1 %907 }
 0x944   :  { %1698 = vpow2.f32 %v911_v8  ;;  %v910_v11 = vsub.f32 %v897_v59, %v908_v10 }
 0x946   :  { %v913_v12 = vmul.f32 1.442695, %v910_v11 }
 0x947   :  { %v928_v13 = vpop.permute.xlu1 %927 }
 0x948   :  { %1700 = vpow2.f32 %v913_v12  ;;  %v933_v14 = vsel %vm271_vm3, %v928_v13, 0 }
 0x949   :  { %1583 = vmatpush3.bf16.msra.mxu1 %v933_v14 }
 0x94a   :  { %1594 = vmatprep.subr.bf16.mxu1 %v1834_v0 }
 0x94b   :  { %v1649_v37 = vpop.permute.xlu1 %1648 }
 0x94c   :  { %v1651_v39 = vunpack.i.h.bf16 %v1649_v37  ;;  %v1650_v40 = vunpack.i.l.bf16 %v1649_v37 }
 0x94e   :  { %v1699_v15 = vpop.eup %1698  ;;  %v1048_v44 = vsel %vm146_vm2, %v1996_v2, %v1651_v39  ;;  %v1047_v45 = vsel %vm146_vm2, %v1994_v61, %v1650_v40  ;;  %v1179_v40 = vsub.s32 5, %v1933_v7 }
 0x94f   :  { %v915_v50 = vsel %vm146_vm2, %v1699_v15, 0.0  ;;  %v1654_v38 = vpop.permute.xlu1 %1653 }
 0x950   :  { %916 = vadd.xlane.f32.xlu0 %v915_v50  ;;  %v1656_v41 = vunpack.i.h.bf16 %v1654_v38  ;;  %v1655_v42 = vunpack.i.l.bf16 %v1654_v38  ;;  %v1173_v38 = vsub.s32 4, %v1933_v7 }
 0x952   :  { %v1701_v54 = vpop.eup %1700  ;;  %v1050_v48 = vsel %vm1049_vm4, %v1047_v45, %v1655_v42  ;;  %v1051_v49 = vsel %vm1049_vm4, %v1048_v44, %v1656_v41  ;;  %v1174_v39 = vrot.slane %v1939_v9, %v1173_v38 }
 0x953   :  { %v918_v55 = vsel %vm146_vm2, %v1701_v54, 0.0 }
 0x954   :  { %919 = vadd.xlane.f32.xlu0 %v918_v55 }
 0x96a   :  { %975 = vrot.lane.b32.xlu0 %v1946_v18, %s1845_s14 }
 0x9dd   :  { %v917_v16 = vpop.xlane.xlu0 %916 }
 0x9de   :  { %1702 = vrcp.f32 %v917_v16 }
 0x9e1   :  { %v920_v17 = vpop.xlane.xlu0 %919 }
 0x9e2   :  { %1704 = vrcp.f32 %v920_v17 }
 0x9e5   :  { %v976_v19 = vpop.permute.xlu0 %975 }
 0x9e6   :  { %v981_v20 = vsel %vm271_vm3, %v976_v19, 0 }
 0x9e7   :  { %1589 = vmatpush3.bf16.msra.mxu0 %v981_v20 }
 0x9e8   :  { %v1703_v21 = vpop.eup %1702  ;;  %1602 = vmatprep.subr.bf16.mxu0 %v1834_v0 }
 0x9e9   :  { %v923_v22 = vmul.f32 %v1703_v21, %v1699_v15 }
 0x9eb   :  { %v925_v24 = vpack.c.bf16 %v923_v22, %v923_v22 }
 0x9ec   :  { %v1705_v25 = vpop.eup %1704 }
 0x9ed   :  { %v924_v26 = vmul.f32 %v1705_v25, %v1701_v54  ;;  %1585 = vmatmul.mubr.msk.bf16.vlgmr.msra.gmra.mrb[28].mxu1 %vm146_vm2, %v925_v24 }
 0x9ee   :  { %1595 = vmatpush3.bf16.msra.mxu1 %v1664_v23  ;;  %1598 = vmatprep.mubr.msk.bf16.mxu1 %vm1835_vm0, %v1834_v0 }
 0x9ef   :  { %v926_v18 = vpack.c.bf16 %v924_v26, %v924_v26  ;;  %1596 = vmatprep.subr.bf16.mxu1 %v1834_v0 }
 0x9f1   :  { %1591 = vmatmul.mubr.msk.bf16.vlgmr.msra.gmra.mrb[32].mxu0 %vm146_vm2, %v926_v18 }
 0x9f2   :  { %1597 = vmatpush3.bf16.msra.mxu1 %v1667_v27  ;;  %1606 = vmatprep.mubr.msk.bf16.mxu0 %vm1835_vm0, %v1834_v0 }
 0x9f3   :  { %1610 = vmatprep.subr.bf16.mxu1 %v1834_v0 }
 0xac0   :  { %v969_v28 = vpop.f32.mrb[28].mxu1 }
 0xac1   :  { %v1586_v29 = vpop.f32.mrb[29].mxu1 }
 0xac2   :  { %v972_v30 = vpop.f32.mrb[30].mxu1  ;;  %v1669_v29 = vld [vmem:[#allocation5 + $0x20] ss:$12 sps:$4 sm:$0xff]  }
 0xac3   :  { %v1587_v31 = vpop.f32.mrb[31].mxu1  ;;  %v1670_v30 = vld [vmem:[#allocation7] sm:$0xff]  }
 0xac4   :  { %v1017_v32 = vpop.f32.mrb[32].mxu0  ;;  %v1671_v31 = vld [vmem:[#allocation7 + $0x8] sm:$0xff]  }
 0xac5   :  { %v1657_v33 = vpack.i.bf16 %v1017_v32, %v969_v28  ;;  %v1592_v34 = vpop.f32.mrb[33].mxu0 }
 0xac6   :  { %v1020_v35 = vpop.f32.mrb[34].mxu0 }
 0xac7   :  { %1658 = vrot.lane.b32.xlu0 %v1657_v33, %s1847_s16  ;;  %v1593_v36 = vpop.f32.mrb[35].mxu0 }
 0xb39   :  { %v1659_v43 = vpop.permute.xlu0 %1658 }
 0xb3a   :  { %v1661_v46 = vunpack.i.h.bf16 %v1659_v43  ;;  %v1660_v47 = vunpack.i.l.bf16 %v1659_v43 }
 0xb3c   :  { %v1054_v51 = vsel %vm1052_vm5, %v1051_v49, %v1661_v46  ;;  %v1053_v52 = vsel %vm1052_vm5, %v1050_v48, %v1660_v47  ;;  %v1180_v46 = vrot.slane %v1939_v9, %v1179_v40 }
 0xb3d   :  { %v1055_v53 = vpack.c.bf16 %v1054_v51, %v1053_v52  ;;  %v1672_v52 = vld [vmem:[#allocation7 + $0x10] sm:$0xff]  }
 0xb3f   :  { %1599 = vmatmul.mubr.msk.bf16.vlgmr.msra.gmra.mrb[32].mxu1 %vm96_vm1, %v1055_v53  ;;  %v1673_v53 = vld [vmem:[#allocation7 + $0x18] sm:$0xff]  }
 0xb40   :  { %1618 = vmatprep.mubr.msk.bf16.mxu1 %vm1835_vm0, %v1834_v0  ;;  %1611 = vmatpush3.bf16.msra.mxu1 %v1670_v30 }
 0xb41   :  { %1612 = vmatprep.subr.bf16.mxu1 %v1834_v0 }
 0xb44   :  { %1613 = vmatpush3.bf16.msra.mxu1 %v1671_v31 }
 0xb45   :  { %1614 = vmatprep.subr.bf16.mxu1 %v1834_v0 }
 0xb48   :  { %1615 = vmatpush3.bf16.msra.mxu1 %v1672_v52 }
 0xb49   :  { %1616 = vmatprep.subr.bf16.mxu1 %v1834_v0 }
 0xb4c   :  { %1617 = vmatpush3.bf16.msra.mxu1 %v1673_v53 }
 0xc12   :  { %v1105_v2 = vpop.f32.mrb[32].mxu1 }
 0xc13   :  { %v1106_v58 = vadd.f32 %v1105_v2, %v1059_v57  ;;  %v1600_v59 = vpop.f32.mrb[33].mxu1 }
 0xc14   :  { %v1108_v61 = vpop.f32.mrb[34].mxu1 }
 0xc15   :  { %v1109_v60 = vadd.f32 %v1108_v61, %v1059_v57  ;;  %1126 = vrot.lane.b32.xlu1 %v1106_v58, %s1848_s17  ;;  %v1601_v62 = vpop.f32.mrb[35].mxu1  ;;  %v1432_v63 = vmul.f32 -1.442695, %v1106_v58  ;;  %v1187_v57 = vrot.slane %v1939_v9, %v1186_v56 }
 0xc17   :  { %1128 = vrot.lane.b32.xlu0 %v1109_v60, %s1848_s17  ;;  %v1433_v1 = vmul.f32 -1.442695, %v1109_v60  ;;  %1706 = vpow2.f32 %v1432_v63 }
 0xc19   :  { %1708 = vpow2.f32 %v1433_v1 }
 0xc21   :  { %v1707_v5 = vpop.eup %1706 }
 0xc22   :  { %v1118_v8 = vadd.f32 1.0, %v1707_v5 }
 0xc23   :  { %v1709_v6 = vpop.eup %1708 }
 0xc24   :  { %v1119_v10 = vadd.f32 1.0, %v1709_v6  ;;  %1710 = vrcp.f32 %v1118_v8  ;;  %v1249_v6 = vsub.s32 3, %v1933_v7 }
 0xc26   :  { %1712 = vrcp.f32 %v1119_v10 }
 0xc2e   :  { %v1711_v11 = vpop.eup %1710 }
 0xc30   :  { %v1713_v14 = vpop.eup %1712 }
 0xc87   :  { %v1127_v12 = vpop.permute.xlu1 %1126 }
 0xc88   :  { %v1132_v13 = vmul.f32 %v1711_v11, %v1127_v12 }
 0xc89   :  { %v1129_v15 = vpop.permute.xlu0 %1128 }
 0xc8a   :  { %v1133_v50 = vmul.f32 %v1713_v14, %v1129_v15  ;;  %1136 = vrot.lane.b32.xlu1 %v1132_v13, %s1836_s30 }
 0xc8c   :  { %1138 = vrot.lane.b32.xlu0 %v1133_v50, %s1836_s30 }
 0xcfc   :  { %v1137_v54 = vpop.permute.xlu1 %1136 }
 0xcfd   :  { %v1142_v55 = vadd.f32 %v1137_v54, %v1922_v3 }
 0xcfe   :  { %v1139_v16 = vpop.permute.xlu0 %1138 }
 0xcff   :  { %v1143_v17 = vadd.f32 %v1139_v16, %v1925_v4  ;;  %v1144_v19 = vsel %vm96_vm1, %v1142_v55, 0.0  ;;  %v1668_v4 = vld [vmem:[#allocation5 + $0x8] ss:$12 sps:$4 sm:$0xff]  }
 0xd00   :  { %1145 = vadd.xlane.f32.xlu1 %v1144_v19  ;;  %1603 = vmatpush3.bf16.msra.mxu0 %v1668_v4 }
 0xd01   :  { %v1147_v20 = vsel %vm96_vm1, %v1143_v17, 0.0  ;;  %1604 = vmatprep.subr.bf16.mxu0 %v1834_v0  ;;  %v1250_v0 = vrot.slane %v1939_v9, %v1249_v6 }
 0xd02   :  { %1148 = vadd.xlane.f32.xlu0 %v1147_v20 }
 0xd04   :  { %1605 = vmatpush3.bf16.msra.mxu0 %v1669_v29 }
 0xd8d   :  { %v1146_v21 = vpop.xlane.xlu1 %1145 }
 0xd8e   :  { %v1151_v22 = vmul.f32 0.03125, %v1146_v21 }
 0xd8f   :  { %v1149_v23 = vpop.xlane.xlu0 %1148 }
 0xd90   :  { %v1153_v24 = vsub.f32 %v1142_v55, %v1151_v22  ;;  %v1152_v25 = vmul.f32 0.03125, %v1149_v23 }
 0xd92   :  { %v1154_v26 = vsub.f32 %v1143_v17, %v1152_v25  ;;  %v1155_v27 = vmul.f32 %v1153_v24, %v1153_v24 }
 0xd94   :  { %v1157_v18 = vsel %vm96_vm1, %v1155_v27, 0.0  ;;  %v1156_v28 = vmul.f32 %v1154_v26, %v1154_v26 }
 0xd95   :  { %1158 = vadd.xlane.f32.xlu0 %v1157_v18 }
 0xd96   :  { %v1160_v3 = vsel %vm96_vm1, %v1156_v28, 0.0 }
 0xd97   :  { %1161 = vadd.xlane.f32.xlu1 %v1160_v3 }
 0xe22   :  { %v1159_v32 = vpop.xlane.xlu0 %1158 }
 0xe23   :  { %v1163_v33 = vmul.f32 0.03125, %v1159_v32 }
 0xe24   :  { %v1162_v34 = vpop.xlane.xlu1 %1161 }
 0xe25   :  { %v1165_v35 = vadd.f32 1e-05, %v1163_v33  ;;  %v1164_v36 = vmul.f32 0.03125, %v1162_v34 }
 0xe27   :  { %1714 = vrsqrt.f32 %v1165_v35  ;;  %v1166_v37 = vadd.f32 1e-05, %v1164_v36 }
 0xe29   :  { %1716 = vrsqrt.f32 %v1166_v37 }
 0xe31   :  { %v1715_v41 = vpop.eup %1714 }
 0xe32   :  { %v1169_v42 = vmul.f32 %v1715_v41, %v1153_v24 }
 0xe33   :  { %v1717_v43 = vpop.eup %1716 }
 0xe34   :  { %v1175_v44 = vmul.f32 %v1174_v39, %v1169_v42  ;;  %v1170_v45 = vmul.f32 %v1717_v43, %v1154_v26  ;;  %v1380_v43 = vsub.s32 6, %v1933_v7 }
 0xe36   :  { %v1176_v47 = vmul.f32 %v1174_v39, %v1170_v45  ;;  %v1181_v48 = vadd.f32 %v1180_v46, %v1175_v44  ;;  %v1386_v44 = vsub.s32 7, %v1933_v7  ;;  %v1730_v45 = vld [vmem:[%s2151_s3] sm:$0xff] }
 0xe38   :  { %v1182_v49 = vadd.f32 %v1180_v46, %v1176_v47  ;;  %v1381_v46 = vrot.slane %v1730_v45, %v1380_v43 }
 0xe3a   :  { %v1183_v51 = vpack.c.bf16 %v1182_v49, %v1181_v48 }
 0xe3c   :  { %1607 = vmatmul.mubr.msk.bf16.vlgmr.msra.gmra.mrb[36].mxu0 %vm96_vm1, %v1183_v51 }
 0xf0f   :  { %v1237_v2 = vpop.f32.mrb[36].mxu0 }
 0xf10   :  { %v1238_v58 = vadd.f32 %v1237_v2, %v1187_v57  ;;  %v1608_v59 = vpop.f32.mrb[37].mxu0 }
 0xf11   :  { %v1240_v61 = vpop.f32.mrb[38].mxu0 }
 0xf12   :  { %v1241_v60 = vadd.f32 %v1240_v61, %v1187_v57  ;;  %v1609_v62 = vpop.f32.mrb[39].mxu0  ;;  %v1244_v63 = vmax.f32 %v1238_v58, 0.0 }
 0xf14   :  { %v1245_v1 = vmax.f32 %v1241_v60, 0.0 }
 0xf16   :  { %v1246_v5 = vpack.c.bf16 %v1245_v1, %v1244_v63 }
 0xf18   :  { %1619 = vmatmul.mubr.msk.bf16.vlgmr.msra.gmra.mrb[36].mxu1 %vm1275_vm6, %v1246_v5 }
 0xfeb   :  { %v1313_v8 = vpop.f32.mrb[36].mxu1 }
 0xfec   :  { %v1314_v10 = vadd.f32 %v1313_v8, %v1250_v0  ;;  %v1620_v11 = vpop.f32.mrb[37].mxu1 }
 0xfed   :  { %v1316_v12 = vpop.f32.mrb[38].mxu1 }
 0xfee   :  { %v1317_v13 = vadd.f32 %v1316_v12, %v1250_v0  ;;  %1334 = vrot.lane.b32.xlu0 %v1314_v10, %s1848_s17  ;;  %v1621_v14 = vpop.f32.mrb[39].mxu1  ;;  %v1442_v15 = vmul.f32 -1.442695, %v1314_v10 }
 0xff0   :  { %1336 = vrot.lane.b32.xlu1 %v1317_v13, %s1848_s17  ;;  %v1443_v50 = vmul.f32 -1.442695, %v1317_v13  ;;  %1718 = vpow2.f32 %v1442_v15 }
 0xff2   :  { %1720 = vpow2.f32 %v1443_v50 }
 0xffa   :  { %v1719_v54 = vpop.eup %1718 }
 0xffb   :  { %v1326_v16 = vadd.f32 1.0, %v1719_v54 }
 0xffc   :  { %v1721_v55 = vpop.eup %1720 }
 0xffd   :  { %v1327_v17 = vadd.f32 1.0, %v1721_v55  ;;  %1722 = vrcp.f32 %v1326_v16 }
 0xfff   :  { %1724 = vrcp.f32 %v1327_v17 }
0x1007   :  { %v1723_v9 = vpop.eup %1722 }
0x1009   :  { %v1725_v21 = vpop.eup %1724 }
0x1060   :  { %v1335_v19 = vpop.permute.xlu0 %1334 }
0x1061   :  { %v1340_v20 = vmul.f32 %v1723_v9, %v1335_v19 }
0x1062   :  { %v1337_v22 = vpop.permute.xlu1 %1336 }
0x1063   :  { %v1341_v23 = vmul.f32 %v1725_v21, %v1337_v22  ;;  %1344 = vrot.lane.b32.xlu1 %v1340_v20, %s1836_s30 }
0x1065   :  { %1346 = vrot.lane.b32.xlu0 %v1341_v23, %s1836_s30 }
0x10d5   :  { %v1345_v24 = vpop.permute.xlu1 %1344 }
0x10d6   :  { %v1350_v25 = vadd.f32 %v1345_v24, %v1181_v48 }
0x10d7   :  { %v1347_v26 = vpop.permute.xlu0 %1346 }
0x10d8   :  { %v1351_v27 = vadd.f32 %v1347_v26, %v1182_v49  ;;  %v1352_v18 = vsel %vm96_vm1, %v1350_v25, 0.0  ;;  %v1387_v49 = vrot.slane %v1730_v45, %v1386_v44 }
0x10d9   :  { %1353 = vadd.xlane.f32.xlu1 %v1352_v18 }
0x10da   :  { %v1355_v28 = vsel %vm96_vm1, %v1351_v27, 0.0 }
0x10db   :  { %1356 = vadd.xlane.f32.xlu0 %v1355_v28 }
0x1166   :  { %v1354_v3 = vpop.xlane.xlu1 %1353 }
0x1167   :  { %v1358_v4 = vmul.f32 0.03125, %v1354_v3 }
0x1168   :  { %v1357_v29 = vpop.xlane.xlu0 %1356 }
0x1169   :  { %v1360_v30 = vsub.f32 %v1350_v25, %v1358_v4  ;;  %v1359_v31 = vmul.f32 0.03125, %v1357_v29 }
0x116b   :  { %v1361_v32 = vsub.f32 %v1351_v27, %v1359_v31  ;;  %v1362_v33 = vmul.f32 %v1360_v30, %v1360_v30 }
0x116d   :  { %v1364_v34 = vsel %vm96_vm1, %v1362_v33, 0.0  ;;  %v1363_v35 = vmul.f32 %v1361_v32, %v1361_v32 }
0x116e   :  { %1365 = vadd.xlane.f32.xlu0 %v1364_v34 }
0x116f   :  { %v1367_v36 = vsel %vm96_vm1, %v1363_v35, 0.0 }
0x1170   :  { %1368 = vadd.xlane.f32.xlu1 %v1367_v36 }
0x11fb   :  { %v1366_v37 = vpop.xlane.xlu0 %1365 }
0x11fc   :  { %v1370_v38 = vmul.f32 0.03125, %v1366_v37 }
0x11fd   :  { %v1369_v39 = vpop.xlane.xlu1 %1368 }
0x11fe   :  { %v1372_v40 = vadd.f32 1e-05, %v1370_v38  ;;  %v1371_v41 = vmul.f32 0.03125, %v1369_v39 }
0x1200   :  { %1726 = vrsqrt.f32 %v1372_v40  ;;  %v1373_v42 = vadd.f32 1e-05, %v1371_v41 }
0x1202   :  { %1728 = vrsqrt.f32 %v1373_v42 }
0x120a   :  { %v1727_v47 = vpop.eup %1726 }
0x120b   :  { %v1376_v48 = vmul.f32 %v1727_v47, %v1360_v30 }
0x120c   :  { %v1729_v51 = vpop.eup %1728 }
0x120d   :  { %v1377_v52 = vmul.f32 %v1729_v51, %v1361_v32  ;;  %v1382_v53 = vmul.f32 %v1381_v46, %v1376_v48 }
0x120f   :  { %v1383_v56 = vmul.f32 %v1381_v46, %v1377_v52  ;;  %v1388_v57 = vadd.f32 %v1387_v49, %v1382_v53 }
0x1211   :  { %v1389_v2 = vadd.f32 %v1387_v49, %v1383_v56  ;;  %1390 = vst.msk [vmem:[#allocation8] sm:$0xff] %vm96_vm1, %v1388_v57 }
0x1213   :  { %1391 = vst.msk [vmem:[#allocation8 + $0x8] sm:$0xff] %vm96_vm1, %v1389_v2 }
0x1214   :  { %1808 = shalt.err (!%p1805_p0)
}
0x1215   :  { %s1809_s24 = scalar_lea.hbm %s2152_s4, 256 }
0x1216   :  { %p1810_p1 = scmp.ne.s32.totalorder %s2152_s4, %s1809_s24  ;;  %p1813_p2 = scmp.lt.u32.totalorder %s1809_s24, %s2152_s4 }
0x1218   :  { %p1815_p3 = pnand %p1813_p2, %p1810_p1 }
0x121a   :  { %1818 = shalt.err (!%p1815_p3)
}
0x121b   :  { %1403 = dma.vmem_to_hbm [thread:$0]  %s1398_s21, 256, %s2152_s4, [#allocation4], %s1829_s1, %s1829_s1, %s1830_s13  }
0x121c   :  { %1823 = dma.done.wait [#allocation4], 256  }
0x121d   :  { %1824 = vsyncadd [#allocation4], 4294967040 }
0x121e   :  { %1407 = vsyncpa [#allocation3], 1 }
0x121f   :  { %1408 = vsyncpa [#allocation6], 1 }
0x1220   :  { %1409 = vsyncpa [#allocation4], 1 }

</bundles_post_ra>
